<compile_context>
chip_gen: v6e
topology: v6e:2x2x1
jax: 0.10.0
libtpu: 0.0.40
codegen_flags: <defaults>
</compile_context>

<pallas_src>
import functools
import math

import jax
import jax.numpy as jnp
from jax import lax
from jax.experimental import pallas as pl
from jax.experimental.pallas import tpu as pltpu

_MIB = 1024 * 1024


# --------------------------------------------------------------------------
# Device / tiling heuristics
# --------------------------------------------------------------------------
def _device_kind():
    try:
        return jax.devices()[0].device_kind.lower()
    except Exception:
        return ""


def _is_v7(kind):
    return "7" in kind


def _eup_has_bf16(kind):
    # v6e / v7x EUPs run bf16 transcendentals at ~2x f32; v5e and older do not.
    return not any(t in kind for t in ("v2", "v3", "v4", "v5"))


def _pick_kv_tile(s, max_tile=512):
    """Largest key-tile <= max_tile dividing S (prefer multiples of 128)."""
    if s <= max_tile:
        return s
    for t in range(max_tile - max_tile % 128, 127, -128):
        if s % t == 0:
            return t
    for t in range(max_tile, 0, -1):
        if s % t == 0:
            return t
    return s


def _per_step_vmem_bytes(bt, s, e, kv_tile, out_bytes):
    """Rough per-grid-step VMEM working set for the kernel below."""
    bse = bt * s * e
    x_io = 2 * 4 * bse                     # x tile (<=f32), double-buffered
    out_io = 2 * out_bytes * bse           # out tile, double-buffered
    proj = (2 + 12 + 2 + 4) * bse          # bf16 x + f32 qkv(3E) + bf16 q + f32 acc
    kv_scr = 2 * 2 * bse                   # bf16 K and V scratch
    smax = 6 * bt * s * kv_tile            # f32 scores + bf16 p per kv tile
    wts = 2 * e * 3 * e + 4 * 3 * e        # bf16 fused weights + f32 bias (1 buffer)
    return x_io + out_io + proj + kv_scr + smax + wts


def _pick_batch_tile(batch, s, e, kv_tile, out_bytes, budget_bytes):
    """Largest batch tile dividing B, under budget, with >= 4 grid steps."""
    bt = max(1, batch // 4) if batch >= 4 else 1
    while bt > 1 and (batch % bt != 0 or
                      _per_step_vmem_bytes(bt, s, e, kv_tile, out_bytes)
                      > budget_bytes):
        bt -= 1
    return bt


# --------------------------------------------------------------------------
# Kernel
# --------------------------------------------------------------------------
def attention_kernel(x_ref, w_ref, b_ref, o_ref, k_scr, v_scr, *,
                     inv_scale, kv_tile, exp_dtype):
    bt, s, e = x_ref.shape

    # Fused QKV projection: fold (Bt, S) into one row dim so it is a single
    # (Bt*S, E) @ (E, 3E) bf16 MXU matmul with f32 accumulation.
    x2 = x_ref[...].astype(jnp.bfloat16).reshape(bt * s, e)
    qkv = jnp.dot(x2, w_ref[...], preferred_element_type=jnp.float32) + b_ref[...]

    # Fold 1/sqrt(E) into q (O(S*E)) instead of the (S, S) scores (O(S^2)).
    q = (qkv[:, :e] * inv_scale).astype(jnp.bfloat16).reshape(bt, s, e)
    # K/V go to bf16 VMEM scratch so the online-softmax loop can slice them
    # with pl.ds on a ref (cheap) instead of value dynamic-slices.
    k_scr[...] = qkv[:, e:2 * e].astype(jnp.bfloat16).reshape(bt, s, e)
    v_scr[...] = qkv[:, 2 * e:].astype(jnp.bfloat16).reshape(bt, s, e)

    n_kv = s // kv_tile

    def kv_step(i, carry):
        m_prev, l_prev, acc_prev = carry
        start = pl.multiple_of(i * kv_tile, kv_tile)
        kt = k_scr[:, pl.ds(start, kv_tile), :]
        vt = v_scr[:, pl.ds(start, kv_tile), :]
        # scores = q @ k^T: contract E directly (no explicit XLU transpose).
        scores = jnp.einsum("bqe,bke->bqk", q, kt,
                            preferred_element_type=jnp.float32)
        m_new = jnp.maximum(m_prev, jnp.max(scores, axis=-1, keepdims=True))
        alpha = jnp.exp(m_prev - m_new)
        # bf16 exp on v6e/v7x (bf16 EUP), f32 on v5e/older; sums stay f32.
        p = jnp.exp((scores - m_new).astype(exp_dtype))
        l_new = alpha * l_prev + jnp.sum(p.astype(jnp.float32), axis=-1,
                                         keepdims=True)
        pv = jnp.einsum("bqk,bke->bqe", p.astype(jnp.bfloat16), vt,
                        preferred_element_type=jnp.float32)
        acc_new = alpha * acc_prev + pv
        return m_new, l_new, acc_new

    m0 = jnp.full((bt, s, 1), -jnp.inf, dtype=jnp.float32)
    l0 = jnp.zeros((bt, s, 1), dtype=jnp.float32)
    acc0 = jnp.zeros((bt, s, e), dtype=jnp.float32)
    m_f, l_f, acc_f = lax.fori_loop(0, n_kv, kv_step, (m0, l0, acc0))

    # Normalization deferred to after the PV matmul; exact reciprocal
    # (correctness-review item) — still O(S*E) multiplies, not O(S^2).
    o_ref[...] = (acc_f * pl.reciprocal(l_f, approx=False)).astype(o_ref.dtype)


# --------------------------------------------------------------------------
# Wrapper
# --------------------------------------------------------------------------
def fuse_qkv_params(wq, bq, wk, bk, wv, bv):
    """One-time param prep: fuse Q/K/V into (E, 3E) bf16 weight + (1, 3E) f32 bias."""
    w = jnp.concatenate([wq, wk, wv], axis=1).astype(jnp.bfloat16)
    b = jnp.concatenate([bq, bk, bv], axis=1).astype(jnp.float32)
    return w, b


def enhanced_self_attention(x, w_qkv, b_qkv, *, out_dtype=None,
                            batch_tile=None, kv_tile=None):
    """x: (B, S, E).  w_qkv: (E, 3E) bf16 (in, out).  b_qkv: (1, 3E) f32."""
    B, S, E = x.shape
    assert w_qkv.shape == (E, 3 * E) and b_qkv.shape == (1, 3 * E)
    out_dtype = x.dtype if out_dtype is None else out_dtype
    out_bytes = jnp.dtype(out_dtype).itemsize
    inv_scale = 1.0 / math.sqrt(E)

    kind = _device_kind()
    # v7x: 64 MiB VMEM per TensorCore; v5e/v6e: 128 MiB.
    phys_vmem = 64 * _MIB if _is_v7(kind) else 128 * _MIB
    budget = 24 * _MIB if _is_v7(kind) else 48 * _MIB

    if kv_tile is None:
        kv_tile = _pick_kv_tile(S)
    if batch_tile is None:
        batch_tile = _pick_batch_tile(B, S, E, kv_tile, out_bytes, budget)
    batch_tile = max(1, min(batch_tile, B))
    while B % batch_tile:
        batch_tile -= 1
    grid = (B // batch_tile,)

    per_step = _per_step_vmem_bytes(batch_tile, S, E, kv_tile, out_bytes)
    vmem_limit = int(min(max(per_step * 1.4, 16 * _MIB), 0.85 * phys_vmem))

    exp_dtype = jnp.bfloat16 if _eup_has_bf16(kind) else jnp.float32

    kernel = functools.partial(attention_kernel, inv_scale=inv_scale,
                               kv_tile=kv_tile, exp_dtype=exp_dtype)

    x_spec = pl.BlockSpec((batch_tile, S, E), lambda b: (b, 0, 0))
    out_spec = pl.BlockSpec((batch_tile, S, E), lambda b: (b, 0, 0))

    def build(single_buffer_weights):
        wb = ({"pipeline_mode": pl.Buffered(1)} if single_buffer_weights else {})
        w_spec = pl.BlockSpec((E, 3 * E), lambda b: (0, 0), **wb)
        b_spec = pl.BlockSpec((1, 3 * E), lambda b: (0, 0), **wb)
        return pl.pallas_call(
            kernel,
            out_shape=jax.ShapeDtypeStruct((B, S, E), out_dtype),
            grid_spec=pltpu.PrefetchScalarGridSpec(
                num_scalar_prefetch=0,
                grid=grid,
                in_specs=[x_spec, w_spec, b_spec],
                out_specs=out_spec,
                scratch_shapes=[
                    pltpu.VMEM((batch_tile, S, E), jnp.bfloat16),  # K scratch
                    pltpu.VMEM((batch_tile, S, E), jnp.bfloat16),  # V scratch
                ],
            ),
            compiler_params=pltpu.CompilerParams(
                dimension_semantics=("parallel",),
                vmem_limit_bytes=vmem_limit,
            ),
        )

    try:
        # Weights never change across grid steps -> single-buffer them.
        return build(True)(x, w_qkv, b_qkv)
    except Exception:
        # Fallback if this JAX build rejects Buffered(1) on a constant block.
        return build(False)(x, w_qkv, b_qkv)


def reference(x, wq, bq, wk, bk, wv, bv):
    """Pure-JAX f32 reference matching the PyTorch forward."""
    E = x.shape[-1]
    q = x @ wq + bq
    k = x @ wk + bk
    v = x @ wv + bv
    scores = jnp.einsum("bqe,bke->bqk", q, k) / math.sqrt(E)
    w = jax.nn.softmax(scores, axis=-1)
    return jnp.einsum("bqk,bke->bqe", w, v)


if __name__ == "__main__":
    key = jax.random.PRNGKey(0)

    def run_case(B, S, E, key):
        kx, kq, kbq, kk, kbk, kv, kbv = jax.random.split(key, 7)
        x = jax.random.normal(kx, (B, S, E), dtype=jnp.float32)

        # nn.Linear(E, E): y = x @ W^T + b; we use (in, out) weights so the
        # kernel computes x @ W + b.  Uniform(-1/sqrt(E), 1/sqrt(E)) init.
        bound = 1.0 / math.sqrt(E)
        init_w = lambda k: jax.random.uniform(k, (E, E), jnp.float32, -bound, bound)
        init_b = lambda k: jax.random.uniform(k, (1, E), jnp.float32, -bound, bound)
        wq, bq = init_w(kq), init_b(kbq)
        wk, bk = init_w(kk), init_b(kbk)
        wv, bv = init_w(kv), init_b(kbv)

        w_qkv, b_qkv = fuse_qkv_params(wq, bq, wk, bk, wv, bv)  # once, at init
        out = jax.block_until_ready(enhanced_self_attention(x, w_qkv, b_qkv))
        ref = reference(x, wq, bq, wk, bk, wv, bv)

        assert out.shape == (B, S, E)
        # bf16 matmul operands (f32 accumulation) -> relaxed tolerance vs f32.
        assert jnp.allclose(out, ref, atol=5e-2, rtol=5e-2), (
            f"mismatch vs reference at {(B, S, E)}: "
            f"max abs err {float(jnp.max(jnp.abs(out - ref)))}")

    # Small shape matching the module's test setup (last dim < 128: masked
    # stores are unavoidable here; real perf should be measured at E >= 128).
    run_case(2, 8, 32, jax.random.fold_in(key, 0))
    # Lane-dense shape: E = 128, 4-step batch grid, exercises the same paths.
    run_case(4, 128, 128, jax.random.fold_in(key, 1))

    print("KERNEL_OK")
</pallas_src>

<mosaic_0001>
module attributes {stable_mosaic.version = 11 : i64} {
  func.func @attention_kernel(%arg0: i32, %arg1: memref<1x8x32xf32, #tpu.memory_space<vmem>>, %arg2: memref<32x96xbf16, #tpu.memory_space<vmem>>, %arg3: memref<1x96xf32, #tpu.memory_space<vmem>>, %arg4: memref<1x8x32xf32, #tpu.memory_space<vmem>>, %arg5: memref<1x8x32xbf16, #tpu.memory_space<vmem>>, %arg6: memref<1x8x32xbf16, #tpu.memory_space<vmem>>) attributes {dimension_semantics = [#tpu.dimension_semantics<parallel>], iteration_bounds = array<i64: 2>, scalar_prefetch = 0 : i64, scratch_operands = 2 : i64, tpu.core_type = #tpu.core_type<tc>, window_params = [{transform_indices = @transform_0, window_bounds = array<i64: 1, 8, 32>}, {pipeline_mode = #tpu.pipeline_mode<synchronous>, transform_indices = @transform_1, window_bounds = array<i64: 32, 96>}, {pipeline_mode = #tpu.pipeline_mode<synchronous>, transform_indices = @transform_2, window_bounds = array<i64: 1, 96>}, {transform_indices = @transform_3, window_bounds = array<i64: 1, 8, 32>}]} {
    %c0 = arith.constant 0 : index
    %c0_0 = arith.constant 0 : index
    %c0_1 = arith.constant 0 : index
    %0 = vector.load %arg1[%c0, %c0_0, %c0_1] : memref<1x8x32xf32, #tpu.memory_space<vmem>>, vector<1x8x32xf32>
    %1 = arith.truncf %0 : vector<1x8x32xf32> to vector<1x8x32xbf16>
    %2 = vector.shape_cast %1 : vector<1x8x32xbf16> to vector<8x32xbf16>
    %c0_2 = arith.constant 0 : index
    %c0_3 = arith.constant 0 : index
    %3 = vector.load %arg2[%c0_2, %c0_3] : memref<32x96xbf16, #tpu.memory_space<vmem>>, vector<32x96xbf16>
    %cst = arith.constant dense<0.000000e+00> : vector<8x96xf32>
    %4 = tpu.matmul %2, %3, %cst {dimension_numbers = #tpu.dot_dimension_numbers<[1], [0], [0], [1], [0, 0, 1, 1], [], []>} : vector<8x32xbf16>, vector<32x96xbf16>, vector<8x96xf32> -> vector<8x96xf32>
    %c0_4 = arith.constant 0 : index
    %c0_5 = arith.constant 0 : index
    %5 = vector.load %arg3[%c0_4, %c0_5] : memref<1x96xf32, #tpu.memory_space<vmem>>, vector<1x96xf32>
    %6 = vector.broadcast %5 : vector<1x96xf32> to vector<8x96xf32>
    %7 = arith.addf %4, %6 : vector<8x96xf32>
    %8 = vector.extract_strided_slice %7 {offsets = [0, 0], sizes = [8, 32], strides = [1, 1]} : vector<8x96xf32> to vector<8x32xf32>
    %cst_6 = arith.constant 0.176776692 : f32
    %9 = vector.broadcast %cst_6 : f32 to vector<8x32xf32>
    %10 = arith.mulf %8, %9 : vector<8x32xf32>
    %11 = arith.truncf %10 : vector<8x32xf32> to vector<8x32xbf16>
    %12 = vector.shape_cast %11 : vector<8x32xbf16> to vector<1x8x32xbf16>
    %13 = vector.extract_strided_slice %7 {offsets = [0, 32], sizes = [8, 32], strides = [1, 1]} : vector<8x96xf32> to vector<8x32xf32>
    %14 = arith.truncf %13 : vector<8x32xf32> to vector<8x32xbf16>
    %15 = vector.shape_cast %14 : vector<8x32xbf16> to vector<1x8x32xbf16>
    %c0_7 = arith.constant 0 : index
    %c0_8 = arith.constant 0 : index
    %c0_9 = arith.constant 0 : index
    %16 = vector.load %arg5[%c0_7, %c0_8, %c0_9] : memref<1x8x32xbf16, #tpu.memory_space<vmem>>, vector<1x8x32xbf16>
    tpu.vector_store %arg5[%c0_7, %c0_8, %c0_9], %15 {strides = array<i32>} : memref<1x8x32xbf16, #tpu.memory_space<vmem>>, vector<1x8x32xbf16>,
    %17 = vector.extract_strided_slice %7 {offsets = [0, 64], sizes = [8, 32], strides = [1, 1]} : vector<8x96xf32> to vector<8x32xf32>
    %18 = arith.truncf %17 : vector<8x32xf32> to vector<8x32xbf16>
    %19 = vector.shape_cast %18 : vector<8x32xbf16> to vector<1x8x32xbf16>
    %c0_10 = arith.constant 0 : index
    %c0_11 = arith.constant 0 : index
    %c0_12 = arith.constant 0 : index
    %20 = vector.load %arg6[%c0_10, %c0_11, %c0_12] : memref<1x8x32xbf16, #tpu.memory_space<vmem>>, vector<1x8x32xbf16>
    tpu.vector_store %arg6[%c0_10, %c0_11, %c0_12], %19 {strides = array<i32>} : memref<1x8x32xbf16, #tpu.memory_space<vmem>>, vector<1x8x32xbf16>,
    %cst_13 = arith.constant 0xFF800000 : f32
    %21 = vector.broadcast %cst_13 : f32 to vector<1x8x1xf32>
    %cst_14 = arith.constant 0.000000e+00 : f32
    %22 = vector.broadcast %cst_14 : f32 to vector<1x8x1xf32>
    %cst_15 = arith.constant 0.000000e+00 : f32
    %23 = vector.broadcast %cst_15 : f32 to vector<1x8x32xf32>
    %c0_i32 = arith.constant 0 : i32
    %c8_i32 = arith.constant 8 : i32
    %24 = arith.muli %c0_i32, %c8_i32 : i32
    %25 = tpu.assume_multiple %24, 8 : i32
    %c0_16 = arith.constant 0 : index
    %26 = arith.index_cast %25 : i32 to index
    %c0_17 = arith.constant 0 : index
    %27 = vector.load %arg5[%c0_16, %26, %c0_17] : memref<1x8x32xbf16, #tpu.memory_space<vmem>>, vector<1x8x32xbf16>
    %c0_18 = arith.constant 0 : index
    %28 = arith.index_cast %25 : i32 to index
    %c0_19 = arith.constant 0 : index
    %29 = vector.load %arg6[%c0_18, %28, %c0_19] : memref<1x8x32xbf16, #tpu.memory_space<vmem>>, vector<1x8x32xbf16>
    "tpu.trace_start"() <{level = 10 : i32, message = "bqe,bke->bqk"}> : () -> ()
    %cst_20 = arith.constant dense<0.000000e+00> : vector<1x8x8xf32>
    %30 = tpu.matmul %12, %27, %cst_20 {dimension_numbers = #tpu.dot_dimension_numbers<[2], [2], [1], [1], [0, 0, 0, 1, 1, 1], [0], [0]>} : vector<1x8x32xbf16>, vector<1x8x32xbf16>, vector<1x8x8xf32> -> vector<1x8x8xf32>
    "tpu.trace_stop"() : () -> ()
    %cst_21 = arith.constant dense<0xFF800000> : vector<1x8xf32>
    %31 = vector.multi_reduction <maximumf>, %30, %cst_21 [2] : vector<1x8x8xf32> to vector<1x8xf32>
    %32 = vector.shape_cast %31 : vector<1x8xf32> to vector<1x8x1xf32>
    %33 = arith.maximumf %21, %32 : vector<1x8x1xf32>
    %34 = arith.subf %21, %33 : vector<1x8x1xf32>
    %35 = math.exp %34 : vector<1x8x1xf32>
    %36 = vector.broadcast %33 : vector<1x8x1xf32> to vector<1x8x8xf32>
    %37 = arith.subf %30, %36 : vector<1x8x8xf32>
    %38 = arith.truncf %37 : vector<1x8x8xf32> to vector<1x8x8xbf16>
    %39 = math.exp %38 : vector<1x8x8xbf16>
    %40 = arith.mulf %35, %22 : vector<1x8x1xf32>
    %41 = arith.extf %39 : vector<1x8x8xbf16> to vector<1x8x8xf32>
    %cst_22 = arith.constant dense<0.000000e+00> : vector<1x8xf32>
    %42 = vector.multi_reduction <add>, %41, %cst_22 [2] : vector<1x8x8xf32> to vector<1x8xf32>
    %43 = vector.shape_cast %42 : vector<1x8xf32> to vector<1x8x1xf32>
    %44 = arith.addf %40, %43 : vector<1x8x1xf32>
    "tpu.trace_start"() <{level = 10 : i32, message = "bqk,bke->bqe"}> : () -> ()
    %cst_23 = arith.constant dense<0.000000e+00> : vector<1x8x32xf32>
    %45 = tpu.matmul %39, %29, %cst_23 {dimension_numbers = #tpu.dot_dimension_numbers<[2], [1], [1], [2], [0, 0, 0, 1, 1, 2], [0], [0]>} : vector<1x8x8xbf16>, vector<1x8x32xbf16>, vector<1x8x32xf32> -> vector<1x8x32xf32>
    "tpu.trace_stop"() : () -> ()
    %46 = vector.broadcast %35 : vector<1x8x1xf32> to vector<1x8x32xf32>
    %47 = arith.mulf %46, %23 : vector<1x8x32xf32>
    %48 = arith.addf %47, %45 : vector<1x8x32xf32>
    %c1_i32 = arith.constant 1 : i32
    %49 = tpu.reciprocal %44 : vector<1x8x1xf32> -> vector<1x8x1xf32>
    %50 = vector.broadcast %49 : vector<1x8x1xf32> to vector<1x8x32xf32>
    %51 = arith.mulf %48, %50 : vector<1x8x32xf32>
    %c0_24 = arith.constant 0 : index
    %c0_25 = arith.constant 0 : index
    %c0_26 = arith.constant 0 : index
    %52 = vector.load %arg4[%c0_24, %c0_25, %c0_26] : memref<1x8x32xf32, #tpu.memory_space<vmem>>, vector<1x8x32xf32>
    tpu.vector_store %arg4[%c0_24, %c0_25, %c0_26], %51 {strides = array<i32>} : memref<1x8x32xf32, #tpu.memory_space<vmem>>, vector<1x8x32xf32>,
    return
  }
  func.func @transform_0(%arg0: i32) -> (i32, i32, i32) {
    %c0_i32 = arith.constant 0 : i32
    %c0_i32_0 = arith.constant 0 : i32
    %c0_i32_1 = arith.constant 0 : i32
    return %arg0, %c0_i32, %c0_i32_0 : i32, i32, i32
  }
  func.func @transform_1(%arg0: i32) -> (i32, i32) {
    %c0_i32 = arith.constant 0 : i32
    %c0_i32_0 = arith.constant 0 : i32
    %c0_i32_1 = arith.constant 0 : i32
    return %c0_i32, %c0_i32_0 : i32, i32
  }
  func.func @transform_2(%arg0: i32) -> (i32, i32) {
    %c0_i32 = arith.constant 0 : i32
    %c0_i32_0 = arith.constant 0 : i32
    %c0_i32_1 = arith.constant 0 : i32
    return %c0_i32, %c0_i32_0 : i32, i32
  }
  func.func @transform_3(%arg0: i32) -> (i32, i32, i32) {
    %c0_i32 = arith.constant 0 : i32
    %c0_i32_0 = arith.constant 0 : i32
    %c0_i32_1 = arith.constant 0 : i32
    return %arg0, %c0_i32, %c0_i32_0 : i32, i32, i32
  }
}

module attributes {stable_mosaic.version = 11 : i64} {
  func.func @attention_kernel(%arg0: i32, %arg1: memref<1x8x32xf32, #tpu.memory_space<vmem>>, %arg2: memref<32x96xbf16, #tpu.memory_space<vmem>>, %arg3: memref<1x96xf32, #tpu.memory_space<vmem>>, %arg4: memref<1x8x32xf32, #tpu.memory_space<vmem>>, %arg5: memref<1x8x32xbf16, #tpu.memory_space<vmem>>, %arg6: memref<1x8x32xbf16, #tpu.memory_space<vmem>>) attributes {dimension_semantics = [#tpu.dimension_semantics<parallel>], iteration_bounds = array<i64: 2>, scalar_prefetch = 0 : i64, scratch_operands = 2 : i64, tpu.core_type = #tpu.core_type<tc>, window_params = [{transform_indices = @transform_0, window_bounds = array<i64: 1, 8, 32>}, {pipeline_mode = #tpu.pipeline_mode<synchronous>, transform_indices = @transform_1, window_bounds = array<i64: 32, 96>}, {pipeline_mode = #tpu.pipeline_mode<synchronous>, transform_indices = @transform_2, window_bounds = array<i64: 1, 96>}, {transform_indices = @transform_3, window_bounds = array<i64: 1, 8, 32>}]} {
    %c0 = arith.constant 0 : index
    %c0_0 = arith.constant 0 : index
    %c0_1 = arith.constant 0 : index
    %0 = vector.load %arg1[%c0, %c0_0, %c0_1] : memref<1x8x32xf32, #tpu.memory_space<vmem>>, vector<1x8x32xf32>
    %1 = arith.truncf %0 : vector<1x8x32xf32> to vector<1x8x32xbf16>
    %2 = vector.shape_cast %1 : vector<1x8x32xbf16> to vector<8x32xbf16>
    %c0_2 = arith.constant 0 : index
    %c0_3 = arith.constant 0 : index
    %3 = vector.load %arg2[%c0_2, %c0_3] : memref<32x96xbf16, #tpu.memory_space<vmem>>, vector<32x96xbf16>
    %cst = arith.constant dense<0.000000e+00> : vector<8x96xf32>
    %4 = tpu.matmul %2, %3, %cst {dimension_numbers = #tpu.dot_dimension_numbers<[1], [0], [0], [1], [0, 0, 1, 1], [], []>} : vector<8x32xbf16>, vector<32x96xbf16>, vector<8x96xf32> -> vector<8x96xf32>
    %c0_4 = arith.constant 0 : index
    %c0_5 = arith.constant 0 : index
    %5 = vector.load %arg3[%c0_4, %c0_5] : memref<1x96xf32, #tpu.memory_space<vmem>>, vector<1x96xf32>
    %6 = vector.broadcast %5 : vector<1x96xf32> to vector<8x96xf32>
    %7 = arith.addf %4, %6 : vector<8x96xf32>
    %8 = vector.extract_strided_slice %7 {offsets = [0, 0], sizes = [8, 32], strides = [1, 1]} : vector<8x96xf32> to vector<8x32xf32>
    %cst_6 = arith.constant 0.176776692 : f32
    %9 = vector.broadcast %cst_6 : f32 to vector<8x32xf32>
    %10 = arith.mulf %8, %9 : vector<8x32xf32>
    %11 = arith.truncf %10 : vector<8x32xf32> to vector<8x32xbf16>
    %12 = vector.shape_cast %11 : vector<8x32xbf16> to vector<1x8x32xbf16>
    %13 = vector.extract_strided_slice %7 {offsets = [0, 32], sizes = [8, 32], strides = [1, 1]} : vector<8x96xf32> to vector<8x32xf32>
    %14 = arith.truncf %13 : vector<8x32xf32> to vector<8x32xbf16>
    %15 = vector.shape_cast %14 : vector<8x32xbf16> to vector<1x8x32xbf16>
    %c0_7 = arith.constant 0 : index
    %c0_8 = arith.constant 0 : index
    %c0_9 = arith.constant 0 : index
    %16 = vector.load %arg5[%c0_7, %c0_8, %c0_9] : memref<1x8x32xbf16, #tpu.memory_space<vmem>>, vector<1x8x32xbf16>
    tpu.vector_store %arg5[%c0_7, %c0_8, %c0_9], %15 {strides = array<i32>} : memref<1x8x32xbf16, #tpu.memory_space<vmem>>, vector<1x8x32xbf16>,
    %17 = vector.extract_strided_slice %7 {offsets = [0, 64], sizes = [8, 32], strides = [1, 1]} : vector<8x96xf32> to vector<8x32xf32>
    %18 = arith.truncf %17 : vector<8x32xf32> to vector<8x32xbf16>
    %19 = vector.shape_cast %18 : vector<8x32xbf16> to vector<1x8x32xbf16>
    %c0_10 = arith.constant 0 : index
    %c0_11 = arith.constant 0 : index
    %c0_12 = arith.constant 0 : index
    %20 = vector.load %arg6[%c0_10, %c0_11, %c0_12] : memref<1x8x32xbf16, #tpu.memory_space<vmem>>, vector<1x8x32xbf16>
    tpu.vector_store %arg6[%c0_10, %c0_11, %c0_12], %19 {strides = array<i32>} : memref<1x8x32xbf16, #tpu.memory_space<vmem>>, vector<1x8x32xbf16>,
    %cst_13 = arith.constant 0xFF800000 : f32
    %21 = vector.broadcast %cst_13 : f32 to vector<1x8x1xf32>
    %cst_14 = arith.constant 0.000000e+00 : f32
    %22 = vector.broadcast %cst_14 : f32 to vector<1x8x1xf32>
    %cst_15 = arith.constant 0.000000e+00 : f32
    %23 = vector.broadcast %cst_15 : f32 to vector<1x8x32xf32>
    %c0_i32 = arith.constant 0 : i32
    %c8_i32 = arith.constant 8 : i32
    %24 = arith.muli %c0_i32, %c8_i32 : i32
    %25 = tpu.assume_multiple %24, 8 : i32
    %c0_16 = arith.constant 0 : index
    %26 = arith.index_cast %25 : i32 to index
    %c0_17 = arith.constant 0 : index
    %27 = vector.load %arg5[%c0_16, %26, %c0_17] : memref<1x8x32xbf16, #tpu.memory_space<vmem>>, vector<1x8x32xbf16>
    %c0_18 = arith.constant 0 : index
    %28 = arith.index_cast %25 : i32 to index
    %c0_19 = arith.constant 0 : index
    %29 = vector.load %arg6[%c0_18, %28, %c0_19] : memref<1x8x32xbf16, #tpu.memory_space<vmem>>, vector<1x8x32xbf16>
    "tpu.trace_start"() <{level = 10 : i32, message = "bqe,bke->bqk"}> : () -> ()
    %cst_20 = arith.constant dense<0.000000e+00> : vector<1x8x8xf32>
    %30 = tpu.matmul %12, %27, %cst_20 {dimension_numbers = #tpu.dot_dimension_numbers<[2], [2], [1], [1], [0, 0, 0, 1, 1, 1], [0], [0]>} : vector<1x8x32xbf16>, vector<1x8x32xbf16>, vector<1x8x8xf32> -> vector<1x8x8xf32>
    "tpu.trace_stop"() : () -> ()
    %cst_21 = arith.constant dense<0xFF800000> : vector<1x8xf32>
    %31 = vector.multi_reduction <maximumf>, %30, %cst_21 [2] : vector<1x8x8xf32> to vector<1x8xf32>
    %32 = vector.shape_cast %31 : vector<1x8xf32> to vector<1x8x1xf32>
    %33 = arith.maximumf %21, %32 : vector<1x8x1xf32>
    %34 = arith.subf %21, %33 : vector<1x8x1xf32>
    %35 = math.exp %34 : vector<1x8x1xf32>
    %36 = vector.broadcast %33 : vector<1x8x1xf32> to vector<1x8x8xf32>
    %37 = arith.subf %30, %36 : vector<1x8x8xf32>
    %38 = arith.truncf %37 : vector<1x8x8xf32> to vector<1x8x8xbf16>
    %39 = math.exp %38 : vector<1x8x8xbf16>
    %40 = arith.mulf %35, %22 : vector<1x8x1xf32>
    %41 = arith.extf %39 : vector<1x8x8xbf16> to vector<1x8x8xf32>
    %cst_22 = arith.constant dense<0.000000e+00> : vector<1x8xf32>
    %42 = vector.multi_reduction <add>, %41, %cst_22 [2] : vector<1x8x8xf32> to vector<1x8xf32>
    %43 = vector.shape_cast %42 : vector<1x8xf32> to vector<1x8x1xf32>
    %44 = arith.addf %40, %43 : vector<1x8x1xf32>
    "tpu.trace_start"() <{level = 10 : i32, message = "bqk,bke->bqe"}> : () -> ()
    %cst_23 = arith.constant dense<0.000000e+00> : vector<1x8x32xf32>
    %45 = tpu.matmul %39, %29, %cst_23 {dimension_numbers = #tpu.dot_dimension_numbers<[2], [1], [1], [2], [0, 0, 0, 1, 1, 2], [0], [0]>} : vector<1x8x8xbf16>, vector<1x8x32xbf16>, vector<1x8x32xf32> -> vector<1x8x32xf32>
    "tpu.trace_stop"() : () -> ()
    %46 = vector.broadcast %35 : vector<1x8x1xf32> to vector<1x8x32xf32>
    %47 = arith.mulf %46, %23 : vector<1x8x32xf32>
    %48 = arith.addf %47, %45 : vector<1x8x32xf32>
    %c1_i32 = arith.constant 1 : i32
    %49 = tpu.reciprocal %44 : vector<1x8x1xf32> -> vector<1x8x1xf32>
    %50 = vector.broadcast %49 : vector<1x8x1xf32> to vector<1x8x32xf32>
    %51 = arith.mulf %48, %50 : vector<1x8x32xf32>
    %c0_24 = arith.constant 0 : index
    %c0_25 = arith.constant 0 : index
    %c0_26 = arith.constant 0 : index
    %52 = vector.load %arg4[%c0_24, %c0_25, %c0_26] : memref<1x8x32xf32, #tpu.memory_space<vmem>>, vector<1x8x32xf32>
    tpu.vector_store %arg4[%c0_24, %c0_25, %c0_26], %51 {strides = array<i32>} : memref<1x8x32xf32, #tpu.memory_space<vmem>>, vector<1x8x32xf32>,
    return
  }
  func.func @transform_0(%arg0: i32) -> (i32, i32, i32) {
    %c0_i32 = arith.constant 0 : i32
    %c0_i32_0 = arith.constant 0 : i32
    %c0_i32_1 = arith.constant 0 : i32
    return %arg0, %c0_i32, %c0_i32_0 : i32, i32, i32
  }
  func.func @transform_1(%arg0: i32) -> (i32, i32) {
    %c0_i32 = arith.constant 0 : i32
    %c0_i32_0 = arith.constant 0 : i32
    %c0_i32_1 = arith.constant 0 : i32
    return %c0_i32, %c0_i32_0 : i32, i32
  }
  func.func @transform_2(%arg0: i32) -> (i32, i32) {
    %c0_i32 = arith.constant 0 : i32
    %c0_i32_0 = arith.constant 0 : i32
    %c0_i32_1 = arith.constant 0 : i32
    return %c0_i32, %c0_i32_0 : i32, i32
  }
  func.func @transform_3(%arg0: i32) -> (i32, i32, i32) {
    %c0_i32 = arith.constant 0 : i32
    %c0_i32_0 = arith.constant 0 : i32
    %c0_i32_1 = arith.constant 0 : i32
    return %arg0, %c0_i32, %c0_i32_0 : i32, i32, i32
  }
}

</mosaic_0001>

<bundles_post_ra>
// kernel: tpu_custom_call.1
= control target key start
LH: loop header
LB: loop body
LE: loop exit
PB: predicated region body
PF: predicated region fallthrough
CT: control target
= control target key end

     0   :  { %8 = vsyncpa [#allocation5], 0  ;;  %s947_s0 = inlined_call_operand.hbm [shape: f32[2,8,32], index: 0, kind: input, shape index: {}]   ;;  %s948_s1 = inlined_call_operand.hbm [shape: bf16[32,96], index: 1, kind: input, shape index: {}]   ;;  %s949_s2 = inlined_call_operand.vmem [shape: f32[1,96], index: 2, kind: input, shape index: {}]   ;;  %s950_s3 = inlined_call_operand.hbm [shape: f32[2,8,32], index: 3, kind: output, shape index: {}]  }
   0x1   :  { %10 = vsyncpa [#allocation5 + $0x1], 0 }
   0x2   :  { %11 = vsyncpa [#allocation8], 0 }
   0x3   :  { %12 = vsyncpa [#allocation6], 0 }
   0x4   :  { %14 = vsyncpa [#allocation6 + $0x1], 0  ;;  %s770_s12 = smov 0   ;;  %s772_s13 = smov 0  }
   0x5   :  { %s774_s14 = smov 0   ;;  %s776_s15 = smov 0  }
   0x6 LB: > { %s791_s16 = sadd.s32 4294967295, %s739_s15   ;;  %s497_s17 = sadd.s32 4294967294, %s739_s15   ;;  %s739_s15 = sphi %s776_s15, %s972_s15   ;;  %s735_s14 = sphi %s774_s14, %s971_s14   ;;  %s731_s13 = sphi %s772_s13, %s970_s13   ;;  %s727_s12 = sphi %s770_s12, %s969_s12  }
   0x7   : > { %p40_p0 = scmp.ne.s32.totalorder %s731_s13, %s727_s12  ;;  %p951_p1 = scmp.eq.s32.totalorder %s791_s16, 0 }
   0x8   : > { %p112_p3 = scmp.eq.s32.totalorder %s497_s17, 1  ;;  %p498_p5 = scmp.ge.s32.totalorder %s739_s15, 1 }
   0x9   : > { %p800_p4 = por %p951_p1, %p40_p0  ;;  %p119_p7 = scmp.lt.s32.totalorder %s739_s15, 3 }
   0xa   : > { %p805_p6 = por %p112_p3, %p40_p0  ;;  %s741_s21 = smov [#allocation7]  }
   0xb   : > { %s955_s18 = scalar_select %p800_p4, 1, 0 }
   0xc   : > { %s956_s19 = scalar_select %p805_p6, 1, 0 }
   0xd   : > { %p810_p8 = pnand %p498_p5, %p119_p7  ;;  %s131_s22 = sshll.u32 %s741_s21, 4  ;;  %s132_s22 = int_to_ptr.vmem [resolvable:$true] %s131_s22 }
   0xe   : > { %s824_s24 = sadd.s32 1, %s739_s15   ;;  %s27_s25 = sadd.s32 1, %s735_s14 }
   0xf   : > { %s957_s20 = scalar_select %p810_p8, 1, 0 }
  0x10   : > { %p554_p9 = pneg %p810_p8  ;;  %s24_s26 = ssub.s32 %s739_s15, %s824_s24 }
  0x11   : > { %s628_s27 = scalar_lea.vmem %s132_s22, 256  ;;  %p636_p5 = scmp.lt.s32.totalorder %s132_s22, %s132_s22 }
  0x12   : > { %p819_p11 = pnand %p554_p9, %p951_p1  ;;  %p629_p13 = scmp.ne.s32.totalorder %s132_s22, %s628_s27 }
  0x13   : > { %p637_p7 = scmp.lt.s32.totalorder %s628_s27, %s628_s27 }
  0x14   : > { %p619_p12 = pneg %p819_p11 }
  0x15   : > { %p638_p10 = por %p637_p7, %p636_p5 }
  0x16   : > { %p631_p0 = pnand %p629_p13, %p619_p12 }
  0x18   : > { %p632_p3 = pneg %p631_p0 }
  0x1a   : > { %p639_p2 = pnand %p638_p10, %p632_p3 }
  0x1c   : > { %642 = shalt.err (!%p639_p2)
}
  0x1d   : > { %s742_s28 = smov 64   ;;  %s743_s29 = smov 4  }
  0x1e   : > { %557 = dma.hbm_to_vmem [thread:$0]  (!%p819_p11), %s948_s1, 256, %s132_s22, [#allocation8], %s742_s28, %s742_s28, %s743_s29  }
  0x1f   : > { %p25_p9 = scmp.eq.s32.totalorder %s24_s26, 0  ;;  %p34_p12 = scmp.ne.s32.totalorder %s735_s14, %s731_s13 }
  0x20   : > { %p35_p10 = scmp.eq.s32.totalorder %s739_s15, 0  ;;  %p567_p2 = scmp.lt.s32.totalorder %s739_s15, 2 }
  0x21   : > { %s841_s5 = scalar_select %p25_p9, %s735_s14, %s27_s25  }
  0x22   : > { %p36_p13 = por %p35_p10, %p34_p12  ;;  %p959_p0 = scmp.eq.s32.totalorder %s791_s16, 1 }
  0x23   : > { %s148_s7 = sand.u32 1, %s735_s14   ;;  %s502_s8 = sshll.u32 %s739_s15, 7 }
  0x24   : > { %p845_p3 = por %p959_p0, %p34_p12  ;;  %s501_s9 = sshll.u32 %s148_s7, 3 }
  0x25   : > { %s854_s17 = scalar_lea.hbm %s947_s0, %s502_s8  ;;  %s152_s21 = scalar_lea.vmem [#allocation4], %s501_s9 }
  0x26   : > { %s960_s6 = scalar_select %p845_p3, 1, 0 }
  0x27   : > { %s159_s22 = sshll.u32 %s152_s21, 4  ;;  %p856_p11 = pnand %p567_p2, %p36_p13  ;;  %s160_s22 = int_to_ptr.vmem [resolvable:$true] %s159_s22 }
  0x28   : > { %s149_s25 = scalar_lea.sflag [#allocation5], %s148_s7  ;;  %s643_s26 = scalar_lea.hbm %s854_s17, 128 }
  0x29   : > { %p644_p5 = scmp.ne.s32.totalorder %s854_s17, %s643_s26  ;;  %p645_p7 = pneg %p856_p11 }
  0x2a   : > { %s648_s29 = scalar_lea.hbm %s947_s0, 256  ;;  %p649_p10 = scmp.lt.s32.totalorder %s854_s17, %s947_s0 }
  0x2b   : > { %p646_p9 = pnand %p645_p7, %p644_p5  ;;  %p650_p2 = scmp.lt.s32.totalorder %s648_s29, %s643_s26 }
  0x2d   : > { %p647_p12 = pneg %p646_p9  ;;  %p651_p13 = por %p650_p2, %p649_p10 }
  0x2f   : > { %p652_p0 = pnand %p651_p13, %p647_p12 }
  0x31   : > { %655 = shalt.err (!%p652_p0)
}
  0x32   : > { %s656_s8 = scalar_lea.vmem %s160_s22, 128  ;;  %s744_s7 = smov [#allocation4]  }
  0x33   : > { %p657_p1 = scmp.ne.s32.totalorder %s160_s22, %s656_s8  ;;  %s661_s9 = sshll.u32 %s744_s7, 4  ;;  %s662_s9 = int_to_ptr.vmem [resolvable:$false] %s661_s9 }
  0x34   : > { %s663_s10 = scalar_lea.vmem %s662_s9, 256  ;;  %p664_p5 = scmp.lt.s32.totalorder %s160_s22, %s662_s9 }
  0x35   : > { %p659_p6 = pnand %p657_p1, %p645_p7  ;;  %p665_p9 = scmp.lt.s32.totalorder %s663_s10, %s656_s8 }
  0x37   : > { %p660_p3 = pneg %p659_p6  ;;  %p666_p4 = por %p665_p9, %p664_p5 }
  0x39   : > { %p667_p8 = pnand %p666_p4, %p660_p3 }
  0x3b   : > { %670 = shalt.err (!%p667_p8)
}
  0x3c   : > { %561 = dma.hbm_to_vmem [thread:$0]  (!%p856_p11), %s854_s17, 128, %s160_s22, %s149_s25  }
  0x3d   : > { %p962_p12 = scmp.ne.s32.totalorder %s957_s20, 0 }
  0x3e   : > { %s877_s11 = sand.u32 (!%p962_p12), 1, %s731_s13   ;;  %p963_p1 = scmp.ne.s32.totalorder (!%p962_p12), %s955_s18, 0 }
  0x3f   : > { %168 = sbr.rel (%p962_p12) target bundleno = 974 (0x3ce), region = 32  ;;  %s504_s21 = sshll.u32 (!%p962_p12), %s877_s11, 3 }
  0x40   : > { %s171_s26 = scalar_lea.sflag (!%p962_p12), [#allocation5], %s877_s11  ;;  %s174_s27 = scalar_lea.vmem (!%p962_p12), [#allocation4], %s504_s21 }
  0x44   : > { %714 = dma.done.wait (%p963_p1), %s171_s26, 128  }
  0x45   : > { %716 = vsyncadd (%p963_p1), %s171_s26, 4294967168  ;;  %p964_p4 = scmp.eq.s32.totalorder %s791_s16, 0 }
  0x47   : > { %718 = dma.done.wait (%p964_p4), [#allocation8], 256   ;;  %p965_p6 = pmov %p964_p4 }
  0x48   : > { %v745_v0 = vmov 0.0   ;;  %vm746_vm0 = vmmov 0   ;;  %v609_v1 = vld [vmem:[#allocation7 + $0x8] sm:$0xff]   ;;  %v610_v2 = vld [vmem:[#allocation7] sm:$0xff]   ;;  %v202_v3 = vld [vmem:[%s174_s27] sm:$0xff]  ;;  %vm227_vm1 = vcmask 261120  }
  0x49   : > { %720 = vsyncadd (%p965_p6), [#allocation8], 4294967040  ;;  %526 = vmatprep.subr.bf16.mxu0 %v745_v0  ;;  %530 = vmatprep.mubr.msk.bf16.mxu0 %vm746_vm0, %v745_v0  ;;  %v203_v4 = vpack.c.bf16 %v202_v3, %v202_v3  ;;  %v507_v5 = vld [vmem:[%s949_s2] ss:$0 sm:$0xff]  ;;  %s747_s17 = smov 64   ;;  %s748_s22 = smov 96  }
  0x4a   : > { %534 = vmatprep.subr.bf16.mxu1 %v745_v0  ;;  %536 = vmatprep.mubr.msk.bf16.mxu1 %vm746_vm0, %v745_v0  ;;  %vm280_vm2 = vcmask 257024   ;;  %vm355_vm3 = vcmask 1043456   ;;  %vm334_vm4 = vcmask 64512   ;;  %s515_s23 = sshll.u32 %s791_s16, 7  ;;  %s200_s25 = scalar_lea.vmem [#allocation9], %s504_s21 }
  0x4b   : > { %527 = vmatpush3.bf16.msra.mxu0 %v609_v1  ;;  %s417_s28 = sshll.u32 %s200_s25, 4  ;;  %s903_s4 = scalar_lea.hbm %s950_s3, %s515_s23  ;;  %s905_s28 = int_to_ptr.vmem [resolvable:$true] %s417_s28 }
  0x4c   : > { %528 = vmatprep.subr.bf16.mxu0 %v745_v0  ;;  %s404_s16 = scalar_lea.sflag [#allocation6], %s877_s11  ;;  %s671_s8 = scalar_lea.vmem %s905_s28, 128 }
  0x4d   : > { %p672_p8 = scmp.ne.s32.totalorder %s905_s28, %s671_s8  ;;  %p966_p3 = scmp.ne.s32.totalorder %s960_s6, 0 }
  0x4e   : > { %s749_s7 = smov [#allocation9]  }
  0x4f   : > { %529 = vmatpush3.bf16.msra.mxu0 %v610_v2  ;;  %p673_p11 = pnand %p672_p8, %p966_p3  ;;  %s675_s9 = sshll.u32 %s749_s7, 4  ;;  %s676_s9 = int_to_ptr.vmem [resolvable:$false] %s675_s9 }
  0x50   : > { %540 = vmatprep.subr.bf16.mxu0 %v745_v0  ;;  %s677_s10 = scalar_lea.vmem %s676_s9, 256  ;;  %p678_p10 = scmp.lt.s32.totalorder %s905_s28, %s676_s9 }
  0x51   : > { %p674_p7 = pneg %p673_p11  ;;  %p679_p2 = scmp.lt.s32.totalorder %s677_s10, %s671_s8 }
  0x52   : > { %531 = vmatmul.mubr.msk.bf16.vlgmr.msra.gmra.mxu0 %vm227_vm1, %v203_v4 }
  0x53   : > { %542 = vmatprep.mubr.msk.bf16.mxu0 %vm746_vm0, %v745_v0  ;;  %p680_p13 = por %p679_p2, %p678_p10 }
  0x55   : > { %p681_p0 = pnand %p680_p13, %p674_p7 }
 0x112   : > { %v265_v6 = vpop.f32.mrf.mxu0 }
 0x113   : > { %v266_v7 = vadd.f32 %v507_v5, %v265_v6 }
 0x114   : > { %v532_v8 = vpop.f32.mrf.mxu0 }
 0x115   : > { %v518_v9 = vpack.c.bf16 %v266_v7, %v266_v7  ;;  %v271_v18 = vmul.f32 0.17677669, %v266_v7 }
 0x116   : > { %v268_v10 = vpop.f32.mrf.mxu0 }
 0x117   : > { %282 = vrot.lane.b32.xlu1 %v518_v9, %s747_s17  ;;  %277 = vrot.lane.b32.xlu0 %v518_v9, %s748_s22  ;;  %v272_v19 = vpack.c.bf16 %v271_v18, %v271_v18 }
 0x118   : > { %v533_v11 = vpop.f32.mrf.mxu0 }
 0x189   : > { %v283_v12 = vpop.permute.xlu1 %282  ;;  %v278_v13 = vpop.permute.xlu0 %277 }
 0x18a   : > { %285 = vst.msk [vmem:[#allocation3] sm:$0xf] %vm280_vm2, %v283_v12  ;;  %281 = vst.msk [vmem:[#allocation2] sm:$0xf] %vm280_vm2, %v278_v13 }
 0x191   : > { %v286_v14 = vld [vmem:[#allocation2] sm:$0xf]  ;;  %v287_v15 = vld [vmem:[#allocation3] sm:$0xf] }
 0x192   : > { %v292_v16 = vsel %vm227_vm1, %v286_v14, 0  ;;  %v357_v17 = vsel %vm355_vm3, %v287_v15, 0 }
 0x193   : > { %535 = vmatpush3.bf16.xpose.msra.mxu1 %v292_v16  ;;  %541 = vmatpush3.bf16.msra.mxu0 %v357_v17 }
 0x19a   : > { %537 = vmatmul.mubr.msk.bf16.vlgmr.msra.gmra.mxu1 %vm227_vm1, %v272_v19 }
 0x25a   : > { %v328_v20 = vpop.f32.mrf.mxu1 }
 0x25b   : > { %v335_v21 = vsel %vm334_vm4, %v328_v20, -inf }
 0x25c   : > { %336 = vmax.xlane.f32.xlu0 %v335_v21  ;;  %v538_v22 = vpop.f32.mrf.mxu1 }
 0x25e   : > { %v331_v23 = vpop.f32.mrf.mxu1 }
 0x260   : > { %v539_v24 = vpop.f32.mrf.mxu1 }
 0x2e5   : > { %v337_v25 = vpop.xlane.xlu0 %336 }
 0x2e6   : > { %v341_v26 = vsub.f32 %v328_v20, %v337_v25  ;;  %v338_v32 = vsub.f32 -inf, %v337_v25 }
 0x2e8   : > { %v342_v27 = vpack.c.bf16 %v341_v26, %v341_v26  ;;  %v339_v33 = vmul.f32 1.442695, %v338_v32 }
 0x2ea   : > { %v344_v28 = vmul.bf16 1069105081, %v342_v27 }
 0x2ec   : > { %611 = vpow.bf16 %v344_v28 }
 0x2ed   : > { %613 = vpow2.f32 %v339_v33 }
 0x2fa   : > { %v612_v29 = vpop.eup %611 }
 0x2fb   : > { %543 = vmatmul.mubr.msk.bf16.vlgmr.msra.gmra.mxu0 %vm334_vm4, %v612_v29  ;;  %v347_v30 = vunpack.c.l.bf16 %v612_v29  ;;  %v614_v34 = vpop.eup %613 }
 0x2fc   : > { %v346_v36 = vmul.f32 0.0, %v614_v34 }
 0x2fd   : > { %v348_v31 = vsel %vm334_vm4, %v347_v30, 0.0 }
 0x2fe   : > { %349 = vadd.xlane.f32.xlu1 %v348_v31 }
 0x387   : > { %v350_v35 = vpop.xlane.xlu1 %349 }
 0x388   : > { %v351_v37 = vadd.f32 %v350_v35, %v346_v36 }
 0x38a   : > { %615 = vrcp.f32 %v351_v37 }
 0x397   : > { %v616_v40 = vpop.eup %615 }
 0x3bb   : > { %v393_v38 = vpop.f32.mrf.mxu0 }
 0x3bc   : > { %v399_v39 = vadd.f32 %v393_v38, %v346_v36 }
 0x3bd   : > { %v544_v41 = vpop.f32.mrf.mxu0 }
 0x3be   : > { %v401_v42 = vmul.f32 %v616_v40, %v399_v39 }
 0x3bf   : > { %v396_v43 = vpop.f32.mrf.mxu0 }
 0x3c0   : > { %402 = vst.msk [vmem:[%s200_s25] sm:$0xff] %vm227_vm1, %v401_v42 }
 0x3c1   : > { %v545_v44 = vpop.f32.mrf.mxu0 }
 0x3c2   : > { %684 = shalt.err (!%p681_p0)
}
 0x3c3   : > { %s685_s21 = scalar_lea.hbm %s903_s4, 128  ;;  %s689_s27 = scalar_lea.hbm %s950_s3, 256 }
 0x3c4   : > { %p686_p5 = scmp.ne.s32.totalorder %s903_s4, %s685_s21  ;;  %p690_p1 = scmp.lt.s32.totalorder %s903_s4, %s950_s3 }
 0x3c5   : > { %p691_p4 = scmp.lt.s32.totalorder %s689_s27, %s685_s21 }
 0x3c6   : > { %p687_p9 = pnand %p686_p5, %p966_p3 }
 0x3c7   : > { %p692_p6 = por %p691_p4, %p690_p1 }
 0x3c8   : > { %p688_p12 = pneg %p687_p9 }
 0x3ca   : > { %p693_p8 = pnand %p692_p6, %p688_p12 }
 0x3cc   : > { %696 = shalt.err (!%p693_p8)
}
 0x3cd   : > { %552 = dma.vmem_to_hbm [thread:$0]  (%p966_p3), %s905_s28, 128, %s903_s4, %s404_s16  }
 0x3ce PF: > { %s429_s17 = sand.u32 1, %s727_s12   ;;  %p967_p11 = scmp.ne.s32.totalorder %s956_s19, 0 }
 0x3cf   : > { %p968_p7 = scmp.ge.s32.totalorder %s739_s15, 2  ;;  %s430_s22 = scalar_lea.sflag [#allocation6], %s429_s17 }
 0x3d1   : > { %p563_p10 = pnand %p968_p7, %p967_p11 }
 0x3d3   : > { %p564_p2 = pneg %p563_p10 }
 0x3d5   : > { %722 = dma.done.wait (%p564_p2), %s430_s22, 128  }
 0x3d6   : > { %724 = vsyncadd (%p564_p2), %s430_s22, 4294967168  ;;  %p17_p13 = scmp.ge.s32.totalorder %s824_s24, 4   ;;  %s969_s12 = smov %s731_s13 }
 0x3d7   : > { %s970_s13 = smov %s735_s14  ;;  %s971_s14 = smov %s841_s5 }
 0x3d8   : > { %s972_s15 = smov %s824_s24  ;;  %19 = sbr.rel (!%p17_p13) target bundleno = 6 (0x6), region = 81 }
 0x3dd   :  { %435 = vsyncpa [#allocation5], 1 }
 0x3de   :  { %437 = vsyncpa [#allocation5 + $0x1], 1 }
 0x3df   :  { %438 = vsyncpa [#allocation8], 1 }
 0x3e0   :  { %439 = vsyncpa [#allocation6], 1 }
 0x3e1   :  { %441 = vsyncpa [#allocation6 + $0x1], 1 }

// kernel: tpu_custom_call.1
= control target key start
LH: loop header
LB: loop body
LE: loop exit
PB: predicated region body
PF: predicated region fallthrough
CT: control target
= control target key end

     0   :  { %8 = vsyncpa [#allocation5], 0  ;;  %s947_s0 = inlined_call_operand.hbm [shape: f32[2,8,32], index: 0, kind: input, shape index: {}]   ;;  %s948_s1 = inlined_call_operand.hbm [shape: bf16[32,96], index: 1, kind: input, shape index: {}]   ;;  %s949_s2 = inlined_call_operand.vmem [shape: f32[1,96], index: 2, kind: input, shape index: {}]   ;;  %s950_s3 = inlined_call_operand.hbm [shape: f32[2,8,32], index: 3, kind: output, shape index: {}]  }
   0x1   :  { %10 = vsyncpa [#allocation5 + $0x1], 0 }
   0x2   :  { %11 = vsyncpa [#allocation8], 0 }
   0x3   :  { %12 = vsyncpa [#allocation6], 0 }
   0x4   :  { %14 = vsyncpa [#allocation6 + $0x1], 0  ;;  %s770_s12 = smov 0   ;;  %s772_s13 = smov 0  }
   0x5   :  { %s774_s14 = smov 0   ;;  %s776_s15 = smov 0  }
   0x6 LB: > { %s791_s16 = sadd.s32 4294967295, %s739_s15   ;;  %s497_s17 = sadd.s32 4294967294, %s739_s15   ;;  %s739_s15 = sphi %s776_s15, %s972_s15   ;;  %s735_s14 = sphi %s774_s14, %s971_s14   ;;  %s731_s13 = sphi %s772_s13, %s970_s13   ;;  %s727_s12 = sphi %s770_s12, %s969_s12  }
   0x7   : > { %p40_p0 = scmp.ne.s32.totalorder %s731_s13, %s727_s12  ;;  %p951_p1 = scmp.eq.s32.totalorder %s791_s16, 0 }
   0x8   : > { %p112_p3 = scmp.eq.s32.totalorder %s497_s17, 1  ;;  %p498_p5 = scmp.ge.s32.totalorder %s739_s15, 1 }
   0x9   : > { %p800_p4 = por %p951_p1, %p40_p0  ;;  %p119_p7 = scmp.lt.s32.totalorder %s739_s15, 3 }
   0xa   : > { %p805_p6 = por %p112_p3, %p40_p0  ;;  %s741_s21 = smov [#allocation7]  }
   0xb   : > { %s955_s18 = scalar_select %p800_p4, 1, 0 }
   0xc   : > { %s956_s19 = scalar_select %p805_p6, 1, 0 }
   0xd   : > { %p810_p8 = pnand %p498_p5, %p119_p7  ;;  %s131_s22 = sshll.u32 %s741_s21, 4  ;;  %s132_s22 = int_to_ptr.vmem [resolvable:$true] %s131_s22 }
   0xe   : > { %s824_s24 = sadd.s32 1, %s739_s15   ;;  %s27_s25 = sadd.s32 1, %s735_s14 }
   0xf   : > { %s957_s20 = scalar_select %p810_p8, 1, 0 }
  0x10   : > { %p554_p9 = pneg %p810_p8  ;;  %s24_s26 = ssub.s32 %s739_s15, %s824_s24 }
  0x11   : > { %s628_s27 = scalar_lea.vmem %s132_s22, 256  ;;  %p636_p5 = scmp.lt.s32.totalorder %s132_s22, %s132_s22 }
  0x12   : > { %p819_p11 = pnand %p554_p9, %p951_p1  ;;  %p629_p13 = scmp.ne.s32.totalorder %s132_s22, %s628_s27 }
  0x13   : > { %p637_p7 = scmp.lt.s32.totalorder %s628_s27, %s628_s27 }
  0x14   : > { %p619_p12 = pneg %p819_p11 }
  0x15   : > { %p638_p10 = por %p637_p7, %p636_p5 }
  0x16   : > { %p631_p0 = pnand %p629_p13, %p619_p12 }
  0x18   : > { %p632_p3 = pneg %p631_p0 }
  0x1a   : > { %p639_p2 = pnand %p638_p10, %p632_p3 }
  0x1c   : > { %642 = shalt.err (!%p639_p2)
}
  0x1d   : > { %s742_s28 = smov 64   ;;  %s743_s29 = smov 4  }
  0x1e   : > { %557 = dma.hbm_to_vmem [thread:$0]  (!%p819_p11), %s948_s1, 256, %s132_s22, [#allocation8], %s742_s28, %s742_s28, %s743_s29  }
  0x1f   : > { %p25_p9 = scmp.eq.s32.totalorder %s24_s26, 0  ;;  %p34_p12 = scmp.ne.s32.totalorder %s735_s14, %s731_s13 }
  0x20   : > { %p35_p10 = scmp.eq.s32.totalorder %s739_s15, 0  ;;  %p567_p2 = scmp.lt.s32.totalorder %s739_s15, 2 }
  0x21   : > { %s841_s5 = scalar_select %p25_p9, %s735_s14, %s27_s25  }
  0x22   : > { %p36_p13 = por %p35_p10, %p34_p12  ;;  %p959_p0 = scmp.eq.s32.totalorder %s791_s16, 1 }
  0x23   : > { %s148_s7 = sand.u32 1, %s735_s14   ;;  %s502_s8 = sshll.u32 %s739_s15, 7 }
  0x24   : > { %p845_p3 = por %p959_p0, %p34_p12  ;;  %s501_s9 = sshll.u32 %s148_s7, 3 }
  0x25   : > { %s854_s17 = scalar_lea.hbm %s947_s0, %s502_s8  ;;  %s152_s21 = scalar_lea.vmem [#allocation4], %s501_s9 }
  0x26   : > { %s960_s6 = scalar_select %p845_p3, 1, 0 }
  0x27   : > { %s159_s22 = sshll.u32 %s152_s21, 4  ;;  %p856_p11 = pnand %p567_p2, %p36_p13  ;;  %s160_s22 = int_to_ptr.vmem [resolvable:$true] %s159_s22 }
  0x28   : > { %s149_s25 = scalar_lea.sflag [#allocation5], %s148_s7  ;;  %s643_s26 = scalar_lea.hbm %s854_s17, 128 }
  0x29   : > { %p644_p5 = scmp.ne.s32.totalorder %s854_s17, %s643_s26  ;;  %p645_p7 = pneg %p856_p11 }
  0x2a   : > { %s648_s29 = scalar_lea.hbm %s947_s0, 256  ;;  %p649_p10 = scmp.lt.s32.totalorder %s854_s17, %s947_s0 }
  0x2b   : > { %p646_p9 = pnand %p645_p7, %p644_p5  ;;  %p650_p2 = scmp.lt.s32.totalorder %s648_s29, %s643_s26 }
  0x2d   : > { %p647_p12 = pneg %p646_p9  ;;  %p651_p13 = por %p650_p2, %p649_p10 }
  0x2f   : > { %p652_p0 = pnand %p651_p13, %p647_p12 }
  0x31   : > { %655 = shalt.err (!%p652_p0)
}
  0x32   : > { %s656_s8 = scalar_lea.vmem %s160_s22, 128  ;;  %s744_s7 = smov [#allocation4]  }
  0x33   : > { %p657_p1 = scmp.ne.s32.totalorder %s160_s22, %s656_s8  ;;  %s661_s9 = sshll.u32 %s744_s7, 4  ;;  %s662_s9 = int_to_ptr.vmem [resolvable:$false] %s661_s9 }
  0x34   : > { %s663_s10 = scalar_lea.vmem %s662_s9, 256  ;;  %p664_p5 = scmp.lt.s32.totalorder %s160_s22, %s662_s9 }
  0x35   : > { %p659_p6 = pnand %p657_p1, %p645_p7  ;;  %p665_p9 = scmp.lt.s32.totalorder %s663_s10, %s656_s8 }
  0x37   : > { %p660_p3 = pneg %p659_p6  ;;  %p666_p4 = por %p665_p9, %p664_p5 }
  0x39   : > { %p667_p8 = pnand %p666_p4, %p660_p3 }
  0x3b   : > { %670 = shalt.err (!%p667_p8)
}
  0x3c   : > { %561 = dma.hbm_to_vmem [thread:$0]  (!%p856_p11), %s854_s17, 128, %s160_s22, %s149_s25  }
  0x3d   : > { %p962_p12 = scmp.ne.s32.totalorder %s957_s20, 0 }
  0x3e   : > { %s877_s11 = sand.u32 (!%p962_p12), 1, %s731_s13   ;;  %p963_p1 = scmp.ne.s32.totalorder (!%p962_p12), %s955_s18, 0 }
  0x3f   : > { %168 = sbr.rel (%p962_p12) target bundleno = 974 (0x3ce), region = 32  ;;  %s504_s21 = sshll.u32 (!%p962_p12), %s877_s11, 3 }
  0x40   : > { %s171_s26 = scalar_lea.sflag (!%p962_p12), [#allocation5], %s877_s11  ;;  %s174_s27 = scalar_lea.vmem (!%p962_p12), [#allocation4], %s504_s21 }
  0x44   : > { %714 = dma.done.wait (%p963_p1), %s171_s26, 128  }
  0x45   : > { %716 = vsyncadd (%p963_p1), %s171_s26, 4294967168  ;;  %p964_p4 = scmp.eq.s32.totalorder %s791_s16, 0 }
  0x47   : > { %718 = dma.done.wait (%p964_p4), [#allocation8], 256   ;;  %p965_p6 = pmov %p964_p4 }
  0x48   : > { %v745_v0 = vmov 0.0   ;;  %vm746_vm0 = vmmov 0   ;;  %v609_v1 = vld [vmem:[#allocation7 + $0x8] sm:$0xff]   ;;  %v610_v2 = vld [vmem:[#allocation7] sm:$0xff]   ;;  %v202_v3 = vld [vmem:[%s174_s27] sm:$0xff]  ;;  %vm227_vm1 = vcmask 261120  }
  0x49   : > { %720 = vsyncadd (%p965_p6), [#allocation8], 4294967040  ;;  %526 = vmatprep.subr.bf16.mxu0 %v745_v0  ;;  %530 = vmatprep.mubr.msk.bf16.mxu0 %vm746_vm0, %v745_v0  ;;  %v203_v4 = vpack.c.bf16 %v202_v3, %v202_v3  ;;  %v507_v5 = vld [vmem:[%s949_s2] ss:$0 sm:$0xff]  ;;  %s747_s17 = smov 64   ;;  %s748_s22 = smov 96  }
  0x4a   : > { %534 = vmatprep.subr.bf16.mxu1 %v745_v0  ;;  %536 = vmatprep.mubr.msk.bf16.mxu1 %vm746_vm0, %v745_v0  ;;  %vm280_vm2 = vcmask 257024   ;;  %vm355_vm3 = vcmask 1043456   ;;  %vm334_vm4 = vcmask 64512   ;;  %s515_s23 = sshll.u32 %s791_s16, 7  ;;  %s200_s25 = scalar_lea.vmem [#allocation9], %s504_s21 }
  0x4b   : > { %527 = vmatpush3.bf16.msra.mxu0 %v609_v1  ;;  %s417_s28 = sshll.u32 %s200_s25, 4  ;;  %s903_s4 = scalar_lea.hbm %s950_s3, %s515_s23  ;;  %s905_s28 = int_to_ptr.vmem [resolvable:$true] %s417_s28 }
  0x4c   : > { %528 = vmatprep.subr.bf16.mxu0 %v745_v0  ;;  %s404_s16 = scalar_lea.sflag [#allocation6], %s877_s11  ;;  %s671_s8 = scalar_lea.vmem %s905_s28, 128 }
  0x4d   : > { %p672_p8 = scmp.ne.s32.totalorder %s905_s28, %s671_s8  ;;  %p966_p3 = scmp.ne.s32.totalorder %s960_s6, 0 }
  0x4e   : > { %s749_s7 = smov [#allocation9]  }
  0x4f   : > { %529 = vmatpush3.bf16.msra.mxu0 %v610_v2  ;;  %p673_p11 = pnand %p672_p8, %p966_p3  ;;  %s675_s9 = sshll.u32 %s749_s7, 4  ;;  %s676_s9 = int_to_ptr.vmem [resolvable:$false] %s675_s9 }
  0x50   : > { %540 = vmatprep.subr.bf16.mxu0 %v745_v0  ;;  %s677_s10 = scalar_lea.vmem %s676_s9, 256  ;;  %p678_p10 = scmp.lt.s32.totalorder %s905_s28, %s676_s9 }
  0x51   : > { %p674_p7 = pneg %p673_p11  ;;  %p679_p2 = scmp.lt.s32.totalorder %s677_s10, %s671_s8 }
  0x52   : > { %531 = vmatmul.mubr.msk.bf16.vlgmr.msra.gmra.mxu0 %vm227_vm1, %v203_v4 }
  0x53   : > { %542 = vmatprep.mubr.msk.bf16.mxu0 %vm746_vm0, %v745_v0  ;;  %p680_p13 = por %p679_p2, %p678_p10 }
  0x55   : > { %p681_p0 = pnand %p680_p13, %p674_p7 }
 0x112   : > { %v265_v6 = vpop.f32.mrf.mxu0 }
 0x113   : > { %v266_v7 = vadd.f32 %v507_v5, %v265_v6 }
 0x114   : > { %v532_v8 = vpop.f32.mrf.mxu0 }
 0x115   : > { %v518_v9 = vpack.c.bf16 %v266_v7, %v266_v7  ;;  %v271_v18 = vmul.f32 0.17677669, %v266_v7 }
 0x116   : > { %v268_v10 = vpop.f32.mrf.mxu0 }
 0x117   : > { %282 = vrot.lane.b32.xlu1 %v518_v9, %s747_s17  ;;  %277 = vrot.lane.b32.xlu0 %v518_v9, %s748_s22  ;;  %v272_v19 = vpack.c.bf16 %v271_v18, %v271_v18 }
 0x118   : > { %v533_v11 = vpop.f32.mrf.mxu0 }
 0x189   : > { %v283_v12 = vpop.permute.xlu1 %282  ;;  %v278_v13 = vpop.permute.xlu0 %277 }
 0x18a   : > { %285 = vst.msk [vmem:[#allocation3] sm:$0xf] %vm280_vm2, %v283_v12  ;;  %281 = vst.msk [vmem:[#allocation2] sm:$0xf] %vm280_vm2, %v278_v13 }
 0x191   : > { %v286_v14 = vld [vmem:[#allocation2] sm:$0xf]  ;;  %v287_v15 = vld [vmem:[#allocation3] sm:$0xf] }
 0x192   : > { %v292_v16 = vsel %vm227_vm1, %v286_v14, 0  ;;  %v357_v17 = vsel %vm355_vm3, %v287_v15, 0 }
 0x193   : > { %535 = vmatpush3.bf16.xpose.msra.mxu1 %v292_v16  ;;  %541 = vmatpush3.bf16.msra.mxu0 %v357_v17 }
 0x19a   : > { %537 = vmatmul.mubr.msk.bf16.vlgmr.msra.gmra.mxu1 %vm227_vm1, %v272_v19 }
 0x25a   : > { %v328_v20 = vpop.f32.mrf.mxu1 }
 0x25b   : > { %v335_v21 = vsel %vm334_vm4, %v328_v20, -inf }
 0x25c   : > { %336 = vmax.xlane.f32.xlu0 %v335_v21  ;;  %v538_v22 = vpop.f32.mrf.mxu1 }
 0x25e   : > { %v331_v23 = vpop.f32.mrf.mxu1 }
 0x260   : > { %v539_v24 = vpop.f32.mrf.mxu1 }
 0x2e5   : > { %v337_v25 = vpop.xlane.xlu0 %336 }
 0x2e6   : > { %v341_v26 = vsub.f32 %v328_v20, %v337_v25  ;;  %v338_v32 = vsub.f32 -inf, %v337_v25 }
 0x2e8   : > { %v342_v27 = vpack.c.bf16 %v341_v26, %v341_v26  ;;  %v339_v33 = vmul.f32 1.442695, %v338_v32 }
 0x2ea   : > { %v344_v28 = vmul.bf16 1069105081, %v342_v27 }
 0x2ec   : > { %611 = vpow.bf16 %v344_v28 }
 0x2ed   : > { %613 = vpow2.f32 %v339_v33 }
 0x2fa   : > { %v612_v29 = vpop.eup %611 }
 0x2fb   : > { %543 = vmatmul.mubr.msk.bf16.vlgmr.msra.gmra.mxu0 %vm334_vm4, %v612_v29  ;;  %v347_v30 = vunpack.c.l.bf16 %v612_v29  ;;  %v614_v34 = vpop.eup %613 }
 0x2fc   : > { %v346_v36 = vmul.f32 0.0, %v614_v34 }
 0x2fd   : > { %v348_v31 = vsel %vm334_vm4, %v347_v30, 0.0 }
 0x2fe   : > { %349 = vadd.xlane.f32.xlu1 %v348_v31 }
 0x387   : > { %v350_v35 = vpop.xlane.xlu1 %349 }
 0x388   : > { %v351_v37 = vadd.f32 %v350_v35, %v346_v36 }
 0x38a   : > { %615 = vrcp.f32 %v351_v37 }
 0x397   : > { %v616_v40 = vpop.eup %615 }
 0x3bb   : > { %v393_v38 = vpop.f32.mrf.mxu0 }
 0x3bc   : > { %v399_v39 = vadd.f32 %v393_v38, %v346_v36 }
 0x3bd   : > { %v544_v41 = vpop.f32.mrf.mxu0 }
 0x3be   : > { %v401_v42 = vmul.f32 %v616_v40, %v399_v39 }
 0x3bf   : > { %v396_v43 = vpop.f32.mrf.mxu0 }
 0x3c0   : > { %402 = vst.msk [vmem:[%s200_s25] sm:$0xff] %vm227_vm1, %v401_v42 }
 0x3c1   : > { %v545_v44 = vpop.f32.mrf.mxu0 }
 0x3c2   : > { %684 = shalt.err (!%p681_p0)
}
 0x3c3   : > { %s685_s21 = scalar_lea.hbm %s903_s4, 128  ;;  %s689_s27 = scalar_lea.hbm %s950_s3, 256 }
 0x3c4   : > { %p686_p5 = scmp.ne.s32.totalorder %s903_s4, %s685_s21  ;;  %p690_p1 = scmp.lt.s32.totalorder %s903_s4, %s950_s3 }
 0x3c5   : > { %p691_p4 = scmp.lt.s32.totalorder %s689_s27, %s685_s21 }
 0x3c6   : > { %p687_p9 = pnand %p686_p5, %p966_p3 }
 0x3c7   : > { %p692_p6 = por %p691_p4, %p690_p1 }
 0x3c8   : > { %p688_p12 = pneg %p687_p9 }
 0x3ca   : > { %p693_p8 = pnand %p692_p6, %p688_p12 }
 0x3cc   : > { %696 = shalt.err (!%p693_p8)
}
 0x3cd   : > { %552 = dma.vmem_to_hbm [thread:$0]  (%p966_p3), %s905_s28, 128, %s903_s4, %s404_s16  }
 0x3ce PF: > { %s429_s17 = sand.u32 1, %s727_s12   ;;  %p967_p11 = scmp.ne.s32.totalorder %s956_s19, 0 }
 0x3cf   : > { %p968_p7 = scmp.ge.s32.totalorder %s739_s15, 2  ;;  %s430_s22 = scalar_lea.sflag [#allocation6], %s429_s17 }
 0x3d1   : > { %p563_p10 = pnand %p968_p7, %p967_p11 }
 0x3d3   : > { %p564_p2 = pneg %p563_p10 }
 0x3d5   : > { %722 = dma.done.wait (%p564_p2), %s430_s22, 128  }
 0x3d6   : > { %724 = vsyncadd (%p564_p2), %s430_s22, 4294967168  ;;  %p17_p13 = scmp.ge.s32.totalorder %s824_s24, 4   ;;  %s969_s12 = smov %s731_s13 }
 0x3d7   : > { %s970_s13 = smov %s735_s14  ;;  %s971_s14 = smov %s841_s5 }
 0x3d8   : > { %s972_s15 = smov %s824_s24  ;;  %19 = sbr.rel (!%p17_p13) target bundleno = 6 (0x6), region = 81 }
 0x3dd   :  { %435 = vsyncpa [#allocation5], 1 }
 0x3de   :  { %437 = vsyncpa [#allocation5 + $0x1], 1 }
 0x3df   :  { %438 = vsyncpa [#allocation8], 1 }
 0x3e0   :  { %439 = vsyncpa [#allocation6], 1 }
 0x3e1   :  { %441 = vsyncpa [#allocation6 + $0x1], 1 }

</bundles_post_ra>
